<compile_context>
chip_gen: v6e
topology: v6e:2x2x1
jax: 0.10.0
libtpu: 0.0.40
codegen_flags: <defaults>
</compile_context>

<pallas_src>
import functools
import math

import jax
import jax.numpy as jnp
from jax.experimental import pallas as pl
from jax.experimental.pallas import tpu as pltpu


# ---------------------------------------------------------------------------
# Kernel
# ---------------------------------------------------------------------------
def bestrq_kernel(x_ref, mask_ref, p_ref, cbt_ref, hid_ref, w_ref, b_ref,
                  tgt_ref, loss_ref, *, use_bf16_exp):
    # x_ref:    (1, tq, IN)      bf16  input_values.view(B, T, IN) tile
    # mask_ref: (1, 1, 1, tq)    int32 mask_time_indices tile, lane-dense
    # p_ref:    (1, IN, CD)      bf16  random projection P for book k
    # cbt_ref:  (1, CD, V)       bf16  unit-norm codebook, transposed (V lanes)
    # hid_ref:  (1, tq, H)       bf16  last_hidden_states tile
    # w_ref:    (1, H, V)        bf16  classifier weight (transposed) for book k
    # b_ref:    (1, 1, V)        f32   classifier bias for book k
    # tgt_ref:  (1, 1, 1, tq)    int32 quantizer targets (-100 where unmasked)
    # loss_ref: (1, 1, 1, 1)     f32   summed CE for (batch b, book k)
    t_idx = pl.program_id(2)

    x = x_ref[0]                    # (tq, IN)  bf16
    P = p_ref[0]                    # (IN, CD)  bf16
    CBt = cbt_ref[0]                # (CD, V)   bf16
    V = CBt.shape[1]

    # ---- RandomProjectionQuantizer ----
    # CB rows are unit-norm (re-normalized in the wrapper), so
    #   argmin_j ||CB_j - normalize(x@P)||  ==  argmax_j (x@P) . CB_j
    # (argmax is invariant to the positive per-row scale of x@P, so no
    #  normalization of h is needed).  First-occurrence tie-break matches
    # torch.argmin.
    h = jnp.dot(x, P, preferred_element_type=jnp.float32)              # (tq, CD)
    dots = jnp.dot(h.astype(jnp.bfloat16), CBt,
                   preferred_element_type=jnp.float32)                 # (tq, V)
    max_d = jnp.max(dots, axis=-1, keepdims=True)                      # (tq, 1)
    iota_row = jax.lax.broadcasted_iota(jnp.int32, (1, V), 1)          # (1, V)
    tgt = jnp.min(jnp.where(dots >= max_d, iota_row, V), axis=-1,
                  keepdims=True)                                       # (tq, 1)

    # lane-dense (1, tq) mask row -> (tq, 1) column (XLU transpose, idle slot)
    mask = jnp.transpose(mask_ref[0, 0]) != 0                          # (tq, 1)
    tgt = jnp.where(mask, tgt, jnp.int32(-100))                        # masked_fill
    # lane-dense store: (tq, 1) column -> (1, tq) row
    tgt_ref[0, 0] = jnp.transpose(tgt)

    # ---- classifier + cross_entropy(ignore_index=-100, reduction='sum') ----
    hs = hid_ref[0]                                                    # (tq, H)
    W = w_ref[0]                                                       # (H, V)
    b = b_ref[0]                                                       # (1, V)
    logits = jnp.dot(hs, W, preferred_element_type=jnp.float32) + b    # (tq, V)
    m = jnp.max(logits, axis=-1, keepdims=True)
    shifted = logits - m
    if use_bf16_exp:
        # v6e/v7x have a bf16 EUP path: ~2x exp throughput, negligible LSE loss.
        expv = jnp.exp(shifted.astype(jnp.bfloat16)).astype(jnp.float32)
    else:
        expv = jnp.exp(shifted)
    lse = m + jnp.log(jnp.sum(expv, axis=-1, keepdims=True))           # (tq, 1)
    tgt_logit = jnp.sum(jnp.where(iota_row == tgt, logits, 0.0), axis=-1,
                        keepdims=True)                                 # (tq, 1)
    per_tok = jnp.where(mask, lse - tgt_logit, 0.0)                    # ignored -> 0

    # accumulate the CE sum for this (b, k) across time tiles
    @pl.when(t_idx == 0)
    def _():
        loss_ref[0, 0] = jnp.zeros((1, 1), jnp.float32)

    loss_ref[0, 0] += jnp.sum(per_tok, axis=0, keepdims=True)


# ---------------------------------------------------------------------------
# Parameter construction (matches the torch module's init)
# ---------------------------------------------------------------------------
def xavier_uniform(key, shape, gain=1.0):
    receptive = 1
    for s in shape[2:]:
        receptive *= s
    fan_in = shape[1] * receptive
    fan_out = shape[0] * receptive
    std = gain * math.sqrt(2.0 / float(fan_in + fan_out))
    a = math.sqrt(3.0) * std
    return jax.random.uniform(key, shape, jnp.float32, -a, a)


def make_params(key, *, num_books, in_dim, cb_dim, codebook_size, hidden_size):
    k1, k2, k3, k4 = jax.random.split(key, 4)
    P = xavier_uniform(k1, (num_books, in_dim, cb_dim))
    # F.normalize over the last dim (re-normalized again in the wrapper).
    CB = jax.random.normal(k2, (num_books, codebook_size, cb_dim), jnp.float32)
    CB = CB / jnp.maximum(
        jnp.sqrt(jnp.sum(CB * CB, axis=-1, keepdims=True)), 1e-12)
    CBt = jnp.swapaxes(CB, -1, -2)           # (K, CD, V): V on the lane axis
    # nn.Linear(hidden_size, codebook_size): weight (V, H) stored transposed (H, V)
    bound = 1.0 / math.sqrt(hidden_size)
    W = jax.random.uniform(k3, (num_books, hidden_size, codebook_size),
                           jnp.float32, -bound, bound)
    b = jax.random.uniform(k4, (num_books, 1, codebook_size),
                           jnp.float32, -bound, bound)
    return dict(P=P, CBt=CBt, W=W, b=b)


# ---------------------------------------------------------------------------
# Generation / VMEM aware tiling
# ---------------------------------------------------------------------------
def _tpu_generation():
    try:
        kind = jax.devices()[0].device_kind.lower()
    except Exception:
        kind = ""
    for g in (7, 6, 5, 4):
        if f"v{g}" in kind:
            return g
    return 6  # conservative default


def _vmem_capacity_bytes(gen):
    try:
        return int(pltpu.get_tpu_info().vmem_capacity_bytes)
    except Exception:
        return (64 if gen >= 7 else 128) * 1024 * 1024


def _round_up(x, m):
    return -(-x // m) * m


def _choose_time_tile(T, V, H, in_dim, cb_dim, gen, vmem_cap):
    """Pick tq (and padded T) so live (tq,V) f32 planes + weight buffers fit VMEM."""
    buf_w = 1 if gen >= 7 else 2            # book weights: Buffered(1) on v7x
    budget = int(0.55 * vmem_cap)

    def usage(tq):
        temporaries = 4 * tq * V * 4                           # dots/logits/exp/select
        weights = buf_w * (H * V + cb_dim * V + in_dim * cb_dim) * 2
        acts = 2 * tq * (H + in_dim) * 2                       # double-buffered bf16
        return temporaries + weights + acts

    T16 = _round_up(T, 16)                   # bf16 sublane tile alignment
    # whole (padded) time axis as one small tile if it fits
    if T16 <= 512 and usage(T16) <= budget:
        return T16, T16
    for tq in (512, 256, 128):               # multiples of 128 -> aligned blocks
        if tq <= T16 and usage(tq) <= budget:
            return tq, _round_up(T, tq)
    tq = min(128, T16)
    return tq, _round_up(T, tq)


# ---------------------------------------------------------------------------
# Forward
# ---------------------------------------------------------------------------
def bestrq_forward(params, input_values, last_hidden_states, mask_time_indices):
    B, T = mask_time_indices.shape
    num_books, in_dim, cb_dim = params["P"].shape
    V = params["CBt"].shape[-1]
    H = last_hidden_states.shape[-1]

    gen = _tpu_generation()
    vmem_cap = _vmem_capacity_bytes(gen)
    tq, T_pad = _choose_time_tile(T, V, H, in_dim, cb_dim, gen, vmem_cap)
    n_t = T_pad // tq
    use_bf16_exp = gen >= 6                  # v5e has no bf16 EUP
    vmem_limit = (56 if gen >= 7 else 100) * 1024 * 1024

    # glue: input_values.view((*mask_time_indices.shape[:2], -1))
    x = input_values.reshape(B, T, -1).astype(jnp.float32)
    hid = last_hidden_states.astype(jnp.float32)
    mask2d = mask_time_indices.astype(jnp.int32)
    if T_pad != T:
        pad = T_pad - T
        x = jnp.pad(x, ((0, 0), (0, pad), (0, 0)))
        hid = jnp.pad(hid, ((0, 0), (0, pad), (0, 0)))
        mask2d = jnp.pad(mask2d, ((0, 0), (0, pad)))     # padded tokens masked -> CE 0

    x = x.astype(jnp.bfloat16)
    hid = hid.astype(jnp.bfloat16)
    mask4 = mask2d.reshape(B, n_t, tq)[:, :, None, :]    # lane-dense (B, n_t, 1, tq)

    # Re-normalize the codebook in f32 (argmax-of-dots shortcut requires exact
    # unit-norm rows, even for externally loaded checkpoints), then cast.
    CBt_f32 = params["CBt"].astype(jnp.float32)
    CBt_f32 = CBt_f32 / jnp.maximum(
        jnp.sqrt(jnp.sum(CBt_f32 * CBt_f32, axis=-2, keepdims=True)), 1e-12)
    P = params["P"].astype(jnp.bfloat16)
    CBt = CBt_f32.astype(jnp.bfloat16)
    W = params["W"].astype(jnp.bfloat16)
    bias = params["b"].astype(jnp.float32)

    # Grid ordering: books outermost only when there is >1 book (weight
    # residency); otherwise batch leads so v7x's 2 TensorCores split work.
    books_first = num_books > 1
    if books_first:
        grid = (num_books, B, n_t)
        act_map = lambda k, bb, t: (bb, t, 0)
        mask_map = lambda k, bb, t: (bb, t, 0, 0)
        book_map = lambda k, bb, t: (k, 0, 0)
        tgt_map = lambda k, bb, t: (bb, k, 0, t)
        loss_map = lambda k, bb, t: (bb, k, 0, 0)
    else:
        grid = (B, num_books, n_t)
        act_map = lambda bb, k, t: (bb, t, 0)
        mask_map = lambda bb, k, t: (bb, t, 0, 0)
        book_map = lambda bb, k, t: (k, 0, 0)
        tgt_map = lambda bb, k, t: (bb, k, 0, t)
        loss_map = lambda bb, k, t: (bb, k, 0, 0)

    # Per-book parameters change only on the slowest axis: single-buffer them
    # on v7x (64 MiB VMEM) to reclaim half of the big-W footprint.
    if gen >= 7:
        def book_spec(shape):
            return pl.BlockSpec(shape, book_map, pipeline_mode=pl.Buffered(1))
    else:
        def book_spec(shape):
            return pl.BlockSpec(shape, book_map)

    cost = pl.CostEstimate(
        flops=2 * B * num_books * T_pad * (in_dim * cb_dim + cb_dim * V + H * V),
        transcendentals=B * num_books * T_pad * (V + 1),
        bytes_accessed=(x.size * 2 + hid.size * 2 + mask4.size * 4
                        + P.size * 2 + CBt.size * 2 + W.size * 2 + bias.size * 4
                        + B * num_books * T_pad * 4 + B * num_books * 4),
    )

    out_shapes = (
        jax.ShapeDtypeStruct((B, num_books, 1, T_pad), jnp.int32),   # targets (lane-dense)
        jax.ShapeDtypeStruct((B, num_books, 1, 1), jnp.float32),     # CE sum per (b, k)
    )
    tgt, loss_bk = pl.pallas_call(
        functools.partial(bestrq_kernel, use_bf16_exp=use_bf16_exp),
        out_shape=out_shapes,
        grid_spec=pltpu.PrefetchScalarGridSpec(
            num_scalar_prefetch=0,
            grid=grid,
            in_specs=[
                pl.BlockSpec((1, tq, in_dim), act_map),
                pl.BlockSpec((1, 1, 1, tq), mask_map),
                book_spec((1, in_dim, cb_dim)),
                book_spec((1, cb_dim, V)),
                pl.BlockSpec((1, tq, H), act_map),
                book_spec((1, H, V)),
                book_spec((1, 1, V)),
            ],
            out_specs=[
                pl.BlockSpec((1, 1, 1, tq), tgt_map),
                pl.BlockSpec((1, 1, 1, 1), loss_map),
            ],
        ),
        compiler_params=pltpu.CompilerParams(
            # time-tile axis is innermost ("arbitrary") so the per-(b,k) loss
            # block accumulates in VMEM; do not reorder without revisiting the
            # pl.when(t==0) zero-init.
            dimension_semantics=("parallel", "parallel", "arbitrary"),
            vmem_limit_bytes=vmem_limit,
        ),
        cost_estimate=cost,
    )(x, mask4, P, CBt, hid, W, bias)

    targets = tgt[:, :, 0, :T]                             # (B, num_books, T)
    loss = jnp.sum(loss_bk) / num_books                    # CE sum / probs.size(1)
    return loss, last_hidden_states, targets


if __name__ == "__main__":
    # small shapes consistent with the module's forward
    B, T = 2, 8
    num_books = 2
    in_dim = 32           # best_rq_in_dim
    cb_dim = 16           # best_rq_codebook_dim
    codebook_size = 256   # best_rq_codebook_size
    hidden_size = 32      # hidden_size

    key = jax.random.PRNGKey(0)
    kp, kx, kh, km = jax.random.split(key, 4)
    params = make_params(kp, num_books=num_books, in_dim=in_dim, cb_dim=cb_dim,
                         codebook_size=codebook_size, hidden_size=hidden_size)
    input_values = jax.random.normal(kx, (B, T * in_dim), jnp.float32)
    last_hidden = jax.random.normal(kh, (B, T, hidden_size), jnp.float32)
    mask_time_indices = jax.random.bernoulli(km, 0.5, (B, T))

    loss, hid, targets = jax.jit(bestrq_forward)(
        params, input_values, last_hidden, mask_time_indices)
    jax.block_until_ready((loss, hid, targets))
    assert loss.shape == ()
    assert targets.shape == (B, num_books, T)
    print("KERNEL_OK")
</pallas_src>

<mosaic_0001>
module attributes {stable_mosaic.version = 11 : i64} {
  func.func @bestrq_kernel(%arg0: i32, %arg1: i32, %arg2: i32, %arg3: memref<1x16x32xbf16, #tpu.memory_space<vmem>>, %arg4: memref<1x1x1x16xi32, #tpu.memory_space<vmem>>, %arg5: memref<1x32x16xbf16, #tpu.memory_space<vmem>>, %arg6: memref<1x16x256xbf16, #tpu.memory_space<vmem>>, %arg7: memref<1x16x32xbf16, #tpu.memory_space<vmem>>, %arg8: memref<1x32x256xbf16, #tpu.memory_space<vmem>>, %arg9: memref<1x1x256xf32, #tpu.memory_space<vmem>>, %arg10: memref<1x1x1x16xi32, #tpu.memory_space<vmem>>, %arg11: memref<1x1x1x1xf32, #tpu.memory_space<vmem>>) attributes {dimension_semantics = [#tpu.dimension_semantics<parallel>, #tpu.dimension_semantics<parallel>, #tpu.dimension_semantics<arbitrary>], iteration_bounds = array<i64: 2, 2, 1>, scalar_prefetch = 0 : i64, scratch_operands = 0 : i64, tpu.core_type = #tpu.core_type<tc>, window_params = [{transform_indices = @transform_0, window_bounds = array<i64: 1, 16, 32>}, {transform_indices = @transform_1, window_bounds = array<i64: 1, 1, 1, 16>}, {transform_indices = @transform_2, window_bounds = array<i64: 1, 32, 16>}, {transform_indices = @transform_3, window_bounds = array<i64: 1, 16, 256>}, {transform_indices = @transform_4, window_bounds = array<i64: 1, 16, 32>}, {transform_indices = @transform_5, window_bounds = array<i64: 1, 32, 256>}, {transform_indices = @transform_6, window_bounds = array<i64: 1, 1, 256>}, {transform_indices = @transform_7, window_bounds = array<i64: 1, 1, 1, 16>}, {transform_indices = @transform_8, window_bounds = array<i64: 1, 1, 1, 1>}]} {
    %c0 = arith.constant 0 : index
    %c0_0 = arith.constant 0 : index
    %c0_1 = arith.constant 0 : index
    %0 = vector.load %arg3[%c0, %c0_0, %c0_1] : memref<1x16x32xbf16, #tpu.memory_space<vmem>>, vector<1x16x32xbf16>
    %1 = vector.shape_cast %0 : vector<1x16x32xbf16> to vector<16x32xbf16>
    %c0_2 = arith.constant 0 : index
    %c0_3 = arith.constant 0 : index
    %c0_4 = arith.constant 0 : index
    %2 = vector.load %arg5[%c0_2, %c0_3, %c0_4] : memref<1x32x16xbf16, #tpu.memory_space<vmem>>, vector<1x32x16xbf16>
    %3 = vector.shape_cast %2 : vector<1x32x16xbf16> to vector<32x16xbf16>
    %c0_5 = arith.constant 0 : index
    %c0_6 = arith.constant 0 : index
    %c0_7 = arith.constant 0 : index
    %4 = vector.load %arg6[%c0_5, %c0_6, %c0_7] : memref<1x16x256xbf16, #tpu.memory_space<vmem>>, vector<1x16x256xbf16>
    %5 = vector.shape_cast %4 : vector<1x16x256xbf16> to vector<16x256xbf16>
    %cst = arith.constant dense<0.000000e+00> : vector<16x16xf32>
    %6 = tpu.matmul %1, %3, %cst {dimension_numbers = #tpu.dot_dimension_numbers<[1], [0], [0], [1], [0, 0, 1, 1], [], []>} : vector<16x32xbf16>, vector<32x16xbf16>, vector<16x16xf32> -> vector<16x16xf32>
    %7 = arith.truncf %6 : vector<16x16xf32> to vector<16x16xbf16>
    %cst_8 = arith.constant dense<0.000000e+00> : vector<16x256xf32>
    %8 = tpu.matmul %7, %5, %cst_8 {dimension_numbers = #tpu.dot_dimension_numbers<[1], [0], [0], [1], [0, 0, 1, 1], [], []>} : vector<16x16xbf16>, vector<16x256xbf16>, vector<16x256xf32> -> vector<16x256xf32>
    %cst_9 = arith.constant dense<0xFF800000> : vector<16xf32>
    %9 = vector.multi_reduction <maximumf>, %8, %cst_9 [1] : vector<16x256xf32> to vector<16xf32>
    %10 = vector.shape_cast %9 : vector<16xf32> to vector<16x1xf32>
    %11 = tpu.iota {dimensions = array<i32: 1>} : vector<1x256xi32>
    %12 = vector.broadcast %10 : vector<16x1xf32> to vector<16x256xf32>
    %13 = arith.cmpf oge, %8, %12 : vector<16x256xf32>
    %c256_i32 = arith.constant 256 : i32
    %14 = vector.shape_cast %11 : vector<1x256xi32> to vector<1x256xi32>
    %15 = vector.broadcast %14 : vector<1x256xi32> to vector<16x256xi32>
    %16 = vector.broadcast %c256_i32 : i32 to vector<16x256xi32>
    %17 = arith.select %13, %15, %16 : vector<16x256xi1>, vector<16x256xi32>
    %cst_10 = arith.constant dense<2147483647> : vector<16xi32>
    %18 = vector.multi_reduction <minsi>, %17, %cst_10 [1] : vector<16x256xi32> to vector<16xi32>
    %19 = vector.shape_cast %18 : vector<16xi32> to vector<16x1xi32>
    %c0_11 = arith.constant 0 : index
    %c0_12 = arith.constant 0 : index
    %c0_13 = arith.constant 0 : index
    %c0_14 = arith.constant 0 : index
    %20 = vector.load %arg4[%c0_11, %c0_12, %c0_13, %c0_14] : memref<1x1x1x16xi32, #tpu.memory_space<vmem>>, vector<1x1x1x16xi32>
    %21 = vector.shape_cast %20 : vector<1x1x1x16xi32> to vector<1x16xi32>
    %22 = tpu.transpose %21, [1, 0] : vector<1x16xi32> -> vector<16x1xi32>
    %c0_i32 = arith.constant 0 : i32
    %23 = vector.broadcast %c0_i32 : i32 to vector<16x1xi32>
    %24 = arith.cmpi ne, %22, %23 : vector<16x1xi32>
    %c-100_i32 = arith.constant -100 : i32
    %25 = vector.broadcast %c-100_i32 : i32 to vector<16x1xi32>
    %26 = arith.select %24, %19, %25 : vector<16x1xi1>, vector<16x1xi32>
    %27 = tpu.transpose %26, [1, 0] : vector<16x1xi32> -> vector<1x16xi32>
    %c0_15 = arith.constant 0 : index
    %c0_16 = arith.constant 0 : index
    %c0_17 = arith.constant 0 : index
    %c0_18 = arith.constant 0 : index
    %28 = vector.load %arg10[%c0_15, %c0_16, %c0_17, %c0_18] : memref<1x1x1x16xi32, #tpu.memory_space<vmem>>, vector<1x1x1x16xi32>
    %29 = vector.shape_cast %28 : vector<1x1x1x16xi32> to vector<1x16xi32>
    %30 = vector.shape_cast %27 : vector<1x16xi32> to vector<1x1x1x16xi32>
    tpu.vector_store %arg10[%c0_15, %c0_16, %c0_17, %c0_18], %30 {strides = array<i32>} : memref<1x1x1x16xi32, #tpu.memory_space<vmem>>, vector<1x1x1x16xi32>,
    %c0_19 = arith.constant 0 : index
    %c0_20 = arith.constant 0 : index
    %c0_21 = arith.constant 0 : index
    %31 = vector.load %arg7[%c0_19, %c0_20, %c0_21] : memref<1x16x32xbf16, #tpu.memory_space<vmem>>, vector<1x16x32xbf16>
    %32 = vector.shape_cast %31 : vector<1x16x32xbf16> to vector<16x32xbf16>
    %c0_22 = arith.constant 0 : index
    %c0_23 = arith.constant 0 : index
    %c0_24 = arith.constant 0 : index
    %33 = vector.load %arg8[%c0_22, %c0_23, %c0_24] : memref<1x32x256xbf16, #tpu.memory_space<vmem>>, vector<1x32x256xbf16>
    %34 = vector.shape_cast %33 : vector<1x32x256xbf16> to vector<32x256xbf16>
    %c0_25 = arith.constant 0 : index
    %c0_26 = arith.constant 0 : index
    %c0_27 = arith.constant 0 : index
    %35 = vector.load %arg9[%c0_25, %c0_26, %c0_27] : memref<1x1x256xf32, #tpu.memory_space<vmem>>, vector<1x1x256xf32>
    %36 = vector.shape_cast %35 : vector<1x1x256xf32> to vector<1x256xf32>
    %cst_28 = arith.constant dense<0.000000e+00> : vector<16x256xf32>
    %37 = tpu.matmul %32, %34, %cst_28 {dimension_numbers = #tpu.dot_dimension_numbers<[1], [0], [0], [1], [0, 0, 1, 1], [], []>} : vector<16x32xbf16>, vector<32x256xbf16>, vector<16x256xf32> -> vector<16x256xf32>
    %38 = vector.broadcast %36 : vector<1x256xf32> to vector<16x256xf32>
    %39 = arith.addf %37, %38 : vector<16x256xf32>
    %cst_29 = arith.constant dense<0xFF800000> : vector<16xf32>
    %40 = vector.multi_reduction <maximumf>, %39, %cst_29 [1] : vector<16x256xf32> to vector<16xf32>
    %41 = vector.shape_cast %40 : vector<16xf32> to vector<16x1xf32>
    %42 = vector.broadcast %41 : vector<16x1xf32> to vector<16x256xf32>
    %43 = arith.subf %39, %42 : vector<16x256xf32>
    %44 = arith.truncf %43 : vector<16x256xf32> to vector<16x256xbf16>
    %45 = math.exp %44 : vector<16x256xbf16>
    %46 = arith.extf %45 : vector<16x256xbf16> to vector<16x256xf32>
    %cst_30 = arith.constant dense<0.000000e+00> : vector<16xf32>
    %47 = vector.multi_reduction <add>, %46, %cst_30 [1] : vector<16x256xf32> to vector<16xf32>
    %48 = vector.shape_cast %47 : vector<16xf32> to vector<16x1xf32>
    %49 = math.log %48 : vector<16x1xf32>
    %50 = arith.addf %41, %49 : vector<16x1xf32>
    %51 = vector.broadcast %11 : vector<1x256xi32> to vector<16x256xi32>
    %52 = vector.broadcast %26 : vector<16x1xi32> to vector<16x256xi32>
    %53 = arith.cmpi eq, %51, %52 : vector<16x256xi32>
    %cst_31 = arith.constant 0.000000e+00 : f32
    %54 = vector.broadcast %cst_31 : f32 to vector<16x256xf32>
    %55 = arith.select %53, %39, %54 : vector<16x256xi1>, vector<16x256xf32>
    %cst_32 = arith.constant dense<0.000000e+00> : vector<16xf32>
    %56 = vector.multi_reduction <add>, %55, %cst_32 [1] : vector<16x256xf32> to vector<16xf32>
    %57 = vector.shape_cast %56 : vector<16xf32> to vector<16x1xf32>
    %58 = arith.subf %50, %57 : vector<16x1xf32>
    %cst_33 = arith.constant 0.000000e+00 : f32
    %59 = vector.broadcast %cst_33 : f32 to vector<16x1xf32>
    %60 = arith.select %24, %58, %59 : vector<16x1xi1>, vector<16x1xf32>
    %c0_i32_34 = arith.constant 0 : i32
    %61 = arith.cmpi eq, %arg2, %c0_i32_34 : i32
    %62 = arith.extui %61 : i1 to i32
    %c0_i32_35 = arith.constant 0 : i32
    %63 = arith.cmpi ne, %62, %c0_i32_35 : i32
    scf.if %63 {
      %cst_45 = arith.constant 0.000000e+00 : f32
      %72 = vector.broadcast %cst_45 : f32 to vector<1x1xf32>
      %c0_46 = arith.constant 0 : index
      %c0_47 = arith.constant 0 : index
      %c0_48 = arith.constant 0 : index
      %c0_49 = arith.constant 0 : index
      %73 = vector.load %arg11[%c0_46, %c0_47, %c0_48, %c0_49] : memref<1x1x1x1xf32, #tpu.memory_space<vmem>>, vector<1x1x1x1xf32>
      %74 = vector.shape_cast %73 : vector<1x1x1x1xf32> to vector<1x1xf32>
      %75 = vector.shape_cast %72 : vector<1x1xf32> to vector<1x1x1x1xf32>
      tpu.vector_store %arg11[%c0_46, %c0_47, %c0_48, %c0_49], %75 {strides = array<i32>} : memref<1x1x1x1xf32, #tpu.memory_space<vmem>>, vector<1x1x1x1xf32>,
    } else {
    }
    %c0_36 = arith.constant 0 : index
    %c0_37 = arith.constant 0 : index
    %c0_38 = arith.constant 0 : index
    %c0_39 = arith.constant 0 : index
    %64 = vector.load %arg11[%c0_36, %c0_37, %c0_38, %c0_39] : memref<1x1x1x1xf32, #tpu.memory_space<vmem>>, vector<1x1x1x1xf32>
    %65 = vector.shape_cast %64 : vector<1x1x1x1xf32> to vector<1x1xf32>
    %cst_40 = arith.constant dense<0.000000e+00> : vector<1xf32>
    %66 = vector.multi_reduction <add>, %60, %cst_40 [0] : vector<16x1xf32> to vector<1xf32>
    %67 = vector.shape_cast %66 : vector<1xf32> to vector<1x1xf32>
    %68 = arith.addf %65, %67 : vector<1x1xf32>
    %c0_41 = arith.constant 0 : index
    %c0_42 = arith.constant 0 : index
    %c0_43 = arith.constant 0 : index
    %c0_44 = arith.constant 0 : index
    %69 = vector.load %arg11[%c0_41, %c0_42, %c0_43, %c0_44] : memref<1x1x1x1xf32, #tpu.memory_space<vmem>>, vector<1x1x1x1xf32>
    %70 = vector.shape_cast %69 : vector<1x1x1x1xf32> to vector<1x1xf32>
    %71 = vector.shape_cast %68 : vector<1x1xf32> to vector<1x1x1x1xf32>
    tpu.vector_store %arg11[%c0_41, %c0_42, %c0_43, %c0_44], %71 {strides = array<i32>} : memref<1x1x1x1xf32, #tpu.memory_space<vmem>>, vector<1x1x1x1xf32>,
    return
  }
  func.func @transform_0(%arg0: i32, %arg1: i32, %arg2: i32) -> (i32, i32, i32) {
    %c0_i32 = arith.constant 0 : i32
    %c0_i32_0 = arith.constant 0 : i32
    return %arg1, %arg2, %c0_i32 : i32, i32, i32
  }
  func.func @transform_1(%arg0: i32, %arg1: i32, %arg2: i32) -> (i32, i32, i32, i32) {
    %c0_i32 = arith.constant 0 : i32
    %c0_i32_0 = arith.constant 0 : i32
    %c0_i32_1 = arith.constant 0 : i32
    return %arg1, %arg2, %c0_i32, %c0_i32_0 : i32, i32, i32, i32
  }
  func.func @transform_2(%arg0: i32, %arg1: i32, %arg2: i32) -> (i32, i32, i32) {
    %c0_i32 = arith.constant 0 : i32
    %c0_i32_0 = arith.constant 0 : i32
    %c0_i32_1 = arith.constant 0 : i32
    return %arg0, %c0_i32, %c0_i32_0 : i32, i32, i32
  }
  func.func @transform_3(%arg0: i32, %arg1: i32, %arg2: i32) -> (i32, i32, i32) {
    %c0_i32 = arith.constant 0 : i32
    %c0_i32_0 = arith.constant 0 : i32
    %c0_i32_1 = arith.constant 0 : i32
    return %arg0, %c0_i32, %c0_i32_0 : i32, i32, i32
  }
  func.func @transform_4(%arg0: i32, %arg1: i32, %arg2: i32) -> (i32, i32, i32) {
    %c0_i32 = arith.constant 0 : i32
    %c0_i32_0 = arith.constant 0 : i32
    return %arg1, %arg2, %c0_i32 : i32, i32, i32
  }
  func.func @transform_5(%arg0: i32, %arg1: i32, %arg2: i32) -> (i32, i32, i32) {
    %c0_i32 = arith.constant 0 : i32
    %c0_i32_0 = arith.constant 0 : i32
    %c0_i32_1 = arith.constant 0 : i32
    return %arg0, %c0_i32, %c0_i32_0 : i32, i32, i32
  }
  func.func @transform_6(%arg0: i32, %arg1: i32, %arg2: i32) -> (i32, i32, i32) {
    %c0_i32 = arith.constant 0 : i32
    %c0_i32_0 = arith.constant 0 : i32
    %c0_i32_1 = arith.constant 0 : i32
    return %arg0, %c0_i32, %c0_i32_0 : i32, i32, i32
  }
  func.func @transform_7(%arg0: i32, %arg1: i32, %arg2: i32) -> (i32, i32, i32, i32) {
    %c0_i32 = arith.constant 0 : i32
    %c0_i32_0 = arith.constant 0 : i32
    return %arg1, %arg0, %c0_i32, %arg2 : i32, i32, i32, i32
  }
  func.func @transform_8(%arg0: i32, %arg1: i32, %arg2: i32) -> (i32, i32, i32, i32) {
    %c0_i32 = arith.constant 0 : i32
    %c0_i32_0 = arith.constant 0 : i32
    %c0_i32_1 = arith.constant 0 : i32
    return %arg1, %arg0, %c0_i32, %c0_i32_0 : i32, i32, i32, i32
  }
}

</mosaic_0001>

<bundles_post_ra>
// kernel: bestrq_forward.1
= control target key start
LH: loop header
LB: loop body
LE: loop exit
PB: predicated region body
PF: predicated region fallthrough
CT: control target
= control target key end

     0   :  { %14 = vsyncpa [#allocation3], 0  ;;  %s1638_s0 = inlined_call_operand.vmem [shape: bf16[2,16,32], index: 0, kind: input, shape index: {}]   ;;  %s1639_s1 = inlined_call_operand.vmem [shape: s32[2,1,1,16], index: 1, kind: input, shape index: {}]   ;;  %s1640_s2 = inlined_call_operand.vmem [shape: bf16[2,32,16], index: 2, kind: input, shape index: {}]   ;;  %s1641_s3 = inlined_call_operand.vmem [shape: bf16[2,16,256], index: 3, kind: input, shape index: {}]   ;;  %s1642_s4 = inlined_call_operand.vmem [shape: bf16[2,16,32], index: 4, kind: input, shape index: {}]   ;;  %s1643_s5 = inlined_call_operand.vmem [shape: bf16[2,32,256], index: 5, kind: input, shape index: {}]   ;;  %s1644_s6 = inlined_call_operand.vmem [shape: f32[2,1,256], index: 6, kind: input, shape index: {}]   ;;  %s1645_s7 = inlined_call_operand.hbm [shape: s32[2,2,1,16], index: 7, kind: output, shape index: {0}]   ;;  %s1646_s8 = inlined_call_operand.vmem [shape: f32[2,2,1,1], index: 8, kind: output, shape index: {1}]  }
   0x1   :  { %16 = vsyncpa [#allocation3 + $0x1], 0  ;;  %s1418_s27 = smov 0   ;;  %s1420_s28 = smov 0  }
   0x2   :  { %s1422_s29 = smov 0   ;;  %s1424_s30 = smov 0  }
   0x3   :  { %s1426_s9 = smov 0   ;;  %s1428_s10 = smov 0  }
   0x4   :  { %s1430_s11 = smov 0   ;;  %s1432_s12 = smov 0  }
   0x5 LB: > { %1653 = sst [smem:[#allocation5_spill]] %s1347_s29  ;;  %s1128_s13 = sadd.s32 4294967295, %s1367_s12   ;;  %s1367_s12 = sphi %s1432_s12, %s22_s12   ;;  %s1363_s11 = sphi %s1430_s11, %s1671_s11   ;;  %s1359_s10 = sphi %s1428_s10, %s1667_s10   ;;  %s1355_s9 = sphi %s1426_s9, %s1666_s9   ;;  %s1351_s30 = sphi %s1424_s30, %s1665_s30   ;;  %s1347_s29 = sphi %s1422_s29, %s1664_s29   ;;  %s1343_s28 = sphi %s1420_s28, %s1670_s28   ;;  %s1339_s27 = sphi %s1418_s27, %s1669_s27  }
   0x6   : > { %1654 = sst [smem:[#allocation6_spill]] %s1359_s10  ;;  %s1129_s14 = sadd.s32 4294967294, %s1367_s12  }
   0x7   : > { %1655 = sst [smem:[#allocation7_spill]] %s1363_s11  ;;  %s37_s15 = sadd.s32 1, %s1359_s10 }
   0x8   : > { %p39_p0 = scmp.ge.s32.totalorder %s37_s15, 2  ;;  %s41_s16 = sadd.s32 1, %s1363_s11 }
   0x9   : > { %p250_p1 = scmp.ne.s32.totalorder %s1347_s29, %s1343_s28  ;;  %p251_p2 = scmp.eq.s32.totalorder %s1128_s13, 3 }
   0xa   : > { %s1673_s15 = smov (%p39_p0, %s37_s15), 0  ;;  %s1675_s16 = smov (!%p39_p0, %s41_s16), %s1363_s11 }
   0xb   : > { %1656 = sst [smem:[#allocation8_spill]] %s1673_s15  ;;  %s233_s17 = ssub.s32 %s1359_s10, %s1673_s15 }
   0xc   : > { %p1469_p3 = por %p251_p2, %p250_p1  ;;  %p43_p4 = scmp.ge.s32.totalorder %s1675_s16, 2 }
   0xd   : > { %p256_p5 = scmp.ne.s32.totalorder %s1343_s28, %s1339_s27  ;;  %p257_p6 = scmp.eq.s32.totalorder %s1129_s14, 3 }
   0xe   : > { %p1132_p7 = scmp.ge.s32.totalorder %s1367_s12, 1  ;;  %s1677_s16 = smov (%p43_p4, %s1675_s16), 0 }
   0xf   : > { %1658 = sst [smem:[#allocation9_spill]] %s1677_s16  ;;  %p1478_p8 = por %p257_p6, %p256_p5 }
  0x10   : > { %p369_p9 = scmp.lt.s32.totalorder %s1367_s12, 5  ;;  %s234_s20 = ssub.s32 %s1363_s11, %s1677_s16 }
  0x11   : > { %s1659_s19 = scalar_select %p1478_p8, 1, 0 }
  0x12   : > { %s240_s21 = sadd.s32 1, %s1347_s29  ;;  %s235_s22 = sor.u32 %s234_s20, %s233_s17 }
  0x13   : > { %1660 = sst [smem:[#allocation10_spill]] %s1659_s19  ;;  %p370_p10 = pnand %p1132_p7, %p369_p9 }
  0x14   : > { %p238_p11 = scmp.eq.s32.totalorder %s235_s22, 0  ;;  %p448_p12 = scmp.lt.s32.totalorder (!%p370_p10), %s1351_s30, 1 }
  0x15   : > { %373 = sbr.rel (%p370_p10) target bundleno = 1218 (0x4c2), region = 48  ;;  %p463_p13 = scmp.lt.s32.totalorder (!%p370_p10), %s1355_s9, 1 }
  0x16   : > { %s1487_s23 = scalar_select %p238_p11, %s1347_s29, %s240_s21  }
  0x17   : > { %s1158_s15 = sshll.u32 (!%p370_p10), %s1351_s30, 1 }
  0x18   : > { %1661 = sst [smem:[#allocation11_spill]] %s1487_s23  ;;  %s934_s16 = sadd.s32 (!%p370_p10), %s1355_s9, %s1158_s15 }
  0x1a   : > { %v1369_v0 = vmov 0.0   ;;  %vm1370_vm0 = vmmov 0   ;;  %s1492_s24 = scalar_select %p448_p12, %s1351_s30, 1  ;;  %vm899_vm1 = vcmask 0   ;;  %vm525_vm2 = vcmask 261120  }
  0x1b   : > { %1170 = vmatprep.subr.bf16.mxu0 %v1369_v0  ;;  %1174 = vmatprep.mubr.msk.bf16.mxu0 %vm1370_vm0, %v1369_v0  ;;  %s1495_s25 = scalar_select %p463_p13, %s1355_s9, 1  ;;  %v1371_v6 = vmov 0   ;;  %vm581_vm3 = vcmask 130048   ;;  %v634_v23 = vlaneseq }
  0x1c   : > { %s1144_s26 = sshll.u32 %s1492_s24, 1  ;;  %s1162_s13 = sshll.u32 %s1492_s24, 3  ;;  %617 = vmatprep.mubr.bf16.mxu1 %v1371_v6  ;;  %1252 = vset.pattern.permute.xlu1 %v1371_v6 }
  0x1d   : > { %s497_s14 = sadd.s32 %s1144_s26, %s1495_s25  ;;  %s1163_s17 = sshll.u32 %s1495_s25, 4  ;;  %v1532_v24 = vand.u32 127, %v634_v23  ;;  %v757_v38 = vshrl.u32 %v634_v23, 7 }
  0x1e   : > { %s1504_s22 = scalar_lea.vmem %s1646_s8, %s497_s14  ;;  %s467_s11 = scalar_lea.vmem %s1640_s2, %s1163_s17 }
  0x1f   : > { %900 = vst.msk [vmem:[%s1504_s22] sm:$0x1] %vm899_vm1, %v1369_v0  ;;  %v1254_v1 = vld [vmem:[%s467_s11 + $0x8] sm:$0xff]   ;;  %s455_s29 = scalar_lea.vmem %s1638_s0, %s1162_s13  ;;  %v1255_v2 = vld [vmem:[%s467_s11] sm:$0xff]   ;;  %s1517_s20 = scalar_lea.vmem %s1642_s4, %s1162_s13  ;;  %v1535_v25 = vadd.s32 128, %v1532_v24  ;;  %v758_v40 = vsub.s32 0, %v757_v38 }
  0x20   : > { %1171 = vmatpush3.bf16.msra.mxu0 %v1254_v1  ;;  %v1256_v3 = vld [vmem:[%s455_s29] sm:$0xff]   ;;  %s472_s14 = scalar_lea.vmem %s1641_s3, %s1163_s17  ;;  %s1166_s29 = sshll.u32 %s1495_s25, 5  ;;  %v762_v41 = vsub.s32 1, %v757_v38 }
  0x21   : > { %1172 = vmatprep.subr.bf16.mxu0 %v1369_v0  ;;  %v1257_v4 = vld [vmem:[%s472_s14 + $0x4] ss:$8 sps:$4 sm:$0xff]   ;;  %v1259_v5 = vld [vmem:[%s472_s14] ss:$8 sps:$4 sm:$0xff]   ;;  %s487_s19 = scalar_lea.vmem %s1643_s5, %s1166_s29  ;;  %s1143_s23 = sshll.u32 %s1495_s25, 1 }
  0x22   : > { %599 = vmatprep.subr.bf16.mxu1 %v1257_v4  ;;  %v1260_v12 = vld [vmem:[%s487_s19 + $0x10] ss:$8 sps:$4 sm:$0xff]   ;;  %v1262_v13 = vld [vmem:[%s487_s19 + $0x14] ss:$8 sps:$4 sm:$0xff]   ;;  %v1265_v14 = vld [vmem:[%s487_s19 + $0x4] ss:$8 sps:$4 sm:$0xff]   ;;  %s491_s21 = scalar_lea.vmem %s1644_s6, %s1143_s23 }
  0x23   : > { %600 = vmatpush1.bf16.msra.mxu1 %v1259_v5  ;;  %v1263_v15 = vld [vmem:[%s487_s19] ss:$8 sps:$4 sm:$0xff]   ;;  %s1159_s14 = sshll.u32 %s934_s16, 4  ;;  %s1372_s30 = smov [#allocation2]  }
  0x24   : > { %1173 = vmatpush3.bf16.msra.mxu0 %v1255_v2  ;;  %806 = vmatprep.subr.bf16.mxu1 %v1262_v13  ;;  %v1266_v16 = vld [vmem:[%s1517_s20] sm:$0xff]   ;;  %s462_s20 = scalar_lea.vmem %s1639_s1, %s1492_s24  ;;  %s436_s24 = sand.u32 1, %s1343_s28  }
  0x25   : > { %v754_v42 = vld [vmem:[%s491_s21] sm:$0x3]  ;;  %s437_s29 = scalar_lea.vmem [#allocation2], %s436_s24  ;;  %s1592_s23 = scalar_lea.hbm %s1645_s7, %s1159_s14 }
  0x26   : > { %v759_v45 = vrot.slane %v754_v42, %v758_v40  ;;  %v763_v46 = vrot.slane %v754_v42, %v762_v41  ;;  %v677_v62 = vld [vmem:[%s462_s20] sm:$0x1]  ;;  %s938_s10 = sshll.u32 %s437_s29, 4  ;;  %s916_s13 = scalar_lea.sflag [#allocation3], %s436_s24  ;;  %s939_s10 = int_to_ptr.vmem [resolvable:$true] %s938_s10 }
  0x27   : > { %1175 = vmatmul.mubr.msk.bf16.vlgmr.msra.gmra.mxu0 %vm525_vm2, %v1256_v3  ;;  %s1275_s17 = scalar_lea.vmem %s939_s10, 16  ;;  %s1279_s9 = sshll.u32 %s1372_s30, 4  ;;  %s1280_s9 = int_to_ptr.vmem [resolvable:$false] %s1279_s9 }
  0x28   : > { %p1276_p0 = scmp.ne.s32.totalorder %s939_s10, %s1275_s17  ;;  %p1282_p4 = scmp.lt.s32.totalorder %s939_s10, %s1280_s9 }
  0x2a   : > { %p1277_p1 = pnand %p1276_p0, %p1469_p3 }
  0x2c   : > { %p1278_p2 = pneg %p1277_p1 }
  0xe7   : > { %v563_v7 = vpop.f32.mrf.mxu0 }
  0xe9   : > { %v1176_v8 = vpop.f32.mrf.mxu0 }
  0xeb   : > { %v566_v9 = vpop.f32.mrf.mxu0 }
  0xec   : > { %v570_v10 = vpack.c.bf16 %v566_v9, %v563_v7 }
  0xed   : > { %v1177_v11 = vpop.f32.mrf.mxu0 }
  0xee   : > { %1151 = vmatmul.mubr.msk.bf16.vlgmr.msra.gmra.mxu1 %vm581_vm3, %v570_v10  ;;  %vm902_vm3 = vcmask 7168  }
  0xef   : > { %826 = vmatprep.mubr.bf16.mxu1 %v1371_v6  ;;  %807 = vmatpush1.bf16.msra.mxu1 %v1260_v12 }
  0xf0   : > { %808 = vmatprep.subr.bf16.mxu1 %v1265_v14 }
  0xf3   : > { %809 = vmatpush1.bf16.msra.mxu1 %v1263_v15 }
  0xf6   : > { %1157 = vmatmul.mubr.msk.bf16.vlgmr.msra.gmra.mxu1 %vm525_vm2, %v1266_v16 }
 0x1ae   : > { %v619_v17 = vpop.f32.mrf.mxu1 }
 0x1b0   : > { %v621_v18 = vpop.f32.mrf.mxu1 }
 0x1b1   : > { %v628_v19 = vmax.f32 %v619_v17, %v621_v18 }
 0x1b2   : > { %v623_v20 = vpop.f32.mrf.mxu1 }
 0x1b3   : > { %629 = vmax.xlane.f32.xlu0 %v628_v19 }
 0x1b4   : > { %v625_v21 = vpop.f32.mrf.mxu1 }
 0x1b5   : > { %v631_v22 = vmax.f32 %v623_v20, %v625_v21 }
 0x1b6   : > { %v828_v39 = vpop.f32.mrf.mxu1 }
 0x1b7   : > { %632 = vmax.xlane.f32.xlu0 %v631_v22  ;;  %v1545_v51 = vadd.f32 %v828_v39, %v759_v45 }
 0x1b8   : > { %v830_v43 = vpop.f32.mrf.mxu1 }
 0x1b9   : > { %v1547_v52 = vadd.f32 %v830_v43, %v763_v46 }
 0x1ba   : > { %v832_v47 = vpop.f32.mrf.mxu1 }
 0x1bb   : > { %v1549_v57 = vadd.f32 %v832_v47, %v759_v45  ;;  %v837_v59 = vmax.f32 %v1545_v51, %v1547_v52 }
 0x1bc   : > { %v834_v53 = vpop.f32.mrf.mxu1 }
 0x1bd   : > { %v1551_v58 = vadd.f32 %v834_v53, %v763_v46 }
 0x1bf   : > { %v840_v61 = vmax.f32 %v1549_v57, %v1551_v58 }
 0x23c   : > { %v630_v26 = vpop.xlane.xlu0 %629 }
 0x23d   : > { %vm637_vm4 = vcmp.ge.f32.partialorder %v619_v17, %v630_v26  ;;  %vm638_vm5 = vcmp.ge.f32.partialorder %v621_v18, %v630_v26 }
 0x23e   : > { %v641_v27 = vsel %vm637_vm4, %v1532_v24, 256  ;;  %v642_v28 = vsel %vm638_vm5, %v1535_v25, 256  ;;  %vm746_vm4 = vcmask 122880  }
 0x23f   : > { %vm645_vm6 = vcmp.lt.s32.totalorder %v641_v27, %v642_v28 }
 0x240   : > { %v633_v29 = vpop.xlane.xlu0 %632  ;;  %v646_v30 = vsel %vm645_vm6, %v641_v27, %v642_v28 }
 0x241   : > { %vm639_vm7 = vcmp.ge.f32.partialorder %v623_v20, %v633_v29  ;;  %vm640_vm8 = vcmp.ge.f32.partialorder %v625_v21, %v633_v29  ;;  %v648_v31 = vshra.s32 %v646_v30, 16  ;;  %v647_v44 = vand.u32 65535, %v646_v30 }
 0x242   : > { %v643_v32 = vsel %vm639_vm7, %v1532_v24, 256  ;;  %v644_v33 = vsel %vm640_vm8, %v1535_v25, 256 }
 0x243   : > { %vm661_vm9 = vcmp.lt.s32.totalorder %v643_v32, %v644_v33  ;;  %v650_v34 = vcvt.s32.f32 %v648_v31  ;;  %v649_v49 = vcvt.s32.f32 %v647_v44 }
 0x244   : > { %v662_v35 = vsel %vm661_vm9, %v643_v32, %v644_v33 }
 0x245   : > { %651 = vmin.xlane.f32.xlu1 %v650_v34  ;;  %v664_v36 = vshra.s32 %v662_v35, 16  ;;  %v663_v50 = vand.u32 65535, %v662_v35 }
 0x247   : > { %v666_v37 = vcvt.s32.f32 %v664_v36  ;;  %v665_v56 = vcvt.s32.f32 %v663_v50 }
 0x249   : > { %667 = vmin.xlane.f32.xlu1 %v666_v37 }
 0x2ce   : > { %v652_v48 = vpop.xlane.xlu1 %651 }
 0x2cf   : > { %vm653_vm10 = vcmp.eq.f32.partialorder %v650_v34, %v652_v48  ;;  %v658_v13 = vcvt.f32.s32 %v652_v48 }
 0x2d0   : > { %v654_v54 = vsel %vm653_vm10, %v649_v49, inf }
 0x2d1   : > { %655 = vmin.xlane.f32.xlu0 %v654_v54  ;;  %v659_v18 = vshll.u32 %v658_v13, 16 }
 0x2d2   : > { %v668_v55 = vpop.xlane.xlu1 %667 }
 0x2d3   : > { %vm669_vm11 = vcmp.eq.f32.partialorder %v666_v37, %v668_v55  ;;  %v674_v19 = vcvt.f32.s32 %v668_v55 }
 0x2d4   : > { %v670_v60 = vsel %vm669_vm11, %v665_v56, inf }
 0x2d5   : > { %838 = vmax.xlane.f32.xlu0 %v837_v59  ;;  %671 = vmin.xlane.f32.xlu1 %v670_v60  ;;  %v675_v23 = vshll.u32 %v674_v19, 16 }
 0x2d9   : > { %841 = vmax.xlane.f32.xlu1 %v840_v61  ;;  %v901_v61 = vld [vmem:[%s1504_s22] sm:$0x1] }
 0x302   : > { %678 = vxpose.xlu0.b32.start.end [1/1] (short) (narrow) %v677_v62, 16 }
 0x32b   : > { %1253 = vset.pattern.permute.xlu0 %v1371_v6 }
 0x35a   : > { %v656_v63 = vpop.xlane.xlu0 %655 }
 0x35b   : > { %v657_v16 = vcvt.f32.s32 %v656_v63 }
 0x35d   : > { %v660_v20 = vadd.s32 %v659_v18, %v657_v16 }
 0x35e   : > { %v672_v0 = vpop.xlane.xlu1 %671  ;;  %v839_v1 = vpop.xlane.xlu0 %838 }
 0x35f   : > { %v843_v3 = vsub.f32 %v1545_v51, %v839_v1  ;;  %v844_v4 = vsub.f32 %v1547_v52, %v839_v1  ;;  %v673_v21 = vcvt.f32.s32 %v672_v0 }
 0x361   : > { %v676_v27 = vadd.s32 %v675_v23, %v673_v21 }
 0x362   : > { %v1562_v2 = vpop.xlane.xlu1 %841 }
 0x363   : > { %v845_v5 = vsub.f32 %v1549_v57, %v1562_v2  ;;  %v846_v7 = vsub.f32 %v1551_v58, %v1562_v2 }
 0x365   : > { %v847_v8 = vpack.c.bf16 %v845_v5, %v843_v3  ;;  %v848_v9 = vpack.c.bf16 %v846_v7, %v844_v4 }
 0x367   : > { %v850_v10 = vmul.bf16 1069105081, %v847_v8  ;;  %v853_v11 = vmul.bf16 1069105081, %v848_v9 }
 0x369   : > { %1267 = vpow.bf16 %v850_v10 }
 0x36a   : > { %1269 = vpow.bf16 %v853_v11 }
 0x377   : > { %v1268_v6 = vpop.eup %1267 }
 0x378   : > { %v1270_v12 = vpop.eup %1269  ;;  %v857_v14 = vunpack.c.h.bf16 %v1268_v6  ;;  %v855_v30 = vunpack.c.l.bf16 %v1268_v6 }
 0x379   : > { %v858_v15 = vunpack.c.h.bf16 %v1270_v12  ;;  %v856_v31 = vunpack.c.l.bf16 %v1270_v12 }
 0x37b   : > { %v862_v17 = vadd.f32 %v858_v15, %v857_v14  ;;  %v859_v32 = vadd.f32 %v856_v31, %v855_v30 }
 0x37d   : > { %863 = vadd.xlane.f32.xlu0 %v862_v17 }
 0x37e   : > { %v694_v22 = vpop.trf.xlu0 }
 0x37f   : > { %vm710_vm12 = vcmp.ne.s32.totalorder %v694_v22, 0 }
 0x380   : > { %v712_v26 = vsel %vm710_vm12, %v660_v20, 4294967196 }
 0x381   : > { %872 = vperm.xlu1 %1252, %v712_v26  }
 0x382   : > { %v695_v28 = vpop.trf.xlu0 }
 0x383   : > { %vm711_vm13 = vcmp.ne.s32.totalorder %v695_v28, 0 }
 0x384   : > { %v713_v29 = vsel %vm711_vm13, %v676_v27, 4294967196 }
 0x385   : > { %875 = vperm.xlu1 %1252, %v713_v29  }
 0x3a9   : > { %860 = vadd.xlane.f32.xlu1 %v859_v32 }
 0x3fc   : > { %v873_v33 = vpop.permute.xlu1 %872 }
 0x3fd   : > { %vm877_vm14 = vcmp.eq.s32.totalorder %v1532_v24, %v873_v33  ;;  %vm878_vm15 = vcmp.eq.s32.totalorder %v1535_v25, %v873_v33 }
 0x3fe   : > { %v881_v34 = vsel %vm877_vm14, %v1545_v51, 0.0  ;;  %v882_v35 = vsel %vm878_vm15, %v1547_v52, 0.0 }
 0x3ff   : > { %v885_v36 = vadd.f32 %v882_v35, %v881_v34 }
 0x400   : > { %v876_v37 = vpop.permute.xlu1 %875 }
 0x401   : > { %vm879_vm0 = vcmp.eq.s32.totalorder %v1532_v24, %v876_v37  ;;  %vm880_vm2 = vcmp.eq.s32.totalorder %v1535_v25, %v876_v37  ;;  %886 = vadd.xlane.f32.xlu1 %v885_v36 }
 0x402   : > { %v883_v38 = vsel %vm879_vm0, %v1549_v57, 0.0  ;;  %v884_v39 = vsel %vm880_vm2, %v1551_v58, 0.0 }
 0x403   : > { %v888_v40 = vadd.f32 %v884_v39, %v883_v38 }
 0x405   : > { %889 = vadd.xlane.f32.xlu1 %v888_v40 }
 0x406   : > { %v864_v42 = vpop.xlane.xlu0 %863 }
 0x432   : > { %v861_v41 = vpop.xlane.xlu1 %860 }
 0x433   : > { %1271 = vlog2.f32 %v861_v41 }
 0x434   : > { %1273 = vlog2.f32 %v864_v42 }
 0x438   : > { %714 = vxpose.xlu1.b32.start [1/2] (short) (narrow) %v712_v26, 8 }
 0x43c   : > { %715 = vxpose.xlu1.b32.end [2/2] (short) (narrow) %v713_v29, 8 }
 0x440   : > { %v1272_v43 = vpop.eup %1271 }
 0x441   : > { %v866_v44 = vmul.f32 0.6931472, %v1272_v43  ;;  %v1274_v45 = vpop.eup %1273 }
 0x442   : > { %v868_v46 = vmul.f32 0.6931472, %v1274_v45 }
 0x443   : > { %v869_v24 = vadd.f32 %v866_v44, %v839_v1 }
 0x444   : > { %v870_v48 = vadd.f32 %v868_v46, %v1562_v2 }
 0x48a   : > { %v887_v47 = vpop.xlane.xlu1 %886 }
 0x48b   : > { %v891_v25 = vsub.f32 %v869_v24, %v887_v47 }
 0x48d   : > { %v893_v50 = vsel %vm710_vm12, %v891_v25, 0.0 }
 0x48e   : > { %v890_v49 = vpop.xlane.xlu1 %889  ;;  %v903_v53 = vsel %vm902_vm3, %v893_v50, 0.0 }
 0x48f   : > { %v892_v51 = vsub.f32 %v870_v48, %v890_v49 }
 0x491   : > { %v894_v52 = vsel %vm711_vm13, %v892_v51, 0.0 }
 0x492   : > { %v904_v54 = vsel %vm902_vm3, %v894_v52, 0.0 }
 0x493   : > { %v905_v55 = vadd.f32 %v904_v54, %v903_v53 }
 0x495   : > { %v906_v56 = vrot.slane %v905_v55, 4 }
 0x497   : > { %v907_v57 = vadd.f32 %v906_v56, %v905_v55 }
 0x499   : > { %v908_v58 = vrot.slane %v907_v57, 2 }
 0x49b   : > { %v909_v59 = vadd.f32 %v908_v58, %v907_v57 }
 0x49d   : > { %v910_v60 = vrot.slane %v909_v59, 1 }
 0x49f   : > { %v911_v62 = vadd.f32 %v910_v60, %v909_v59 }
 0x4a1   : > { %v912_v63 = vadd.f32 %v911_v62, %v901_v61 }
 0x4a3   : > { %914 = vst.msk [vmem:[%s1504_s22] sm:$0x1] %vm899_vm1, %v912_v63  ;;  %s1281_s22 = scalar_lea.vmem %s1280_s9, 32 }
 0x4a4   : > { %p1283_p5 = scmp.lt.s32.totalorder %s1281_s22, %s1275_s17 }
 0x4a6   : > { %p1284_p6 = por %p1283_p5, %p1282_p4 }
 0x4a8   : > { %p1285_p7 = pnand %p1284_p6, %p1278_p2 }
 0x4b4   : > { %v730_v0 = vpop.trf.xlu1 }
 0x4b5   : > { %747 = vst.msk [vmem:[%s437_s29] sm:$0x1] %vm746_vm4, %v730_v0 }
 0x4b6   : > { %1288 = shalt.err (!%p1285_p7)
}
 0x4b7   : > { %s1289_s21 = scalar_lea.hbm %s1592_s23, 16  ;;  %s1293_s20 = scalar_lea.hbm %s1645_s7, 64 }
 0x4b8   : > { %p1290_p9 = scmp.ne.s32.totalorder %s1592_s23, %s1289_s21  ;;  %p1294_p12 = scmp.lt.s32.totalorder %s1592_s23, %s1645_s7 }
 0x4b9   : > { %p1295_p13 = scmp.lt.s32.totalorder %s1293_s20, %s1289_s21 }
 0x4ba   : > { %p1291_p10 = pnand %p1290_p9, %p1469_p3 }
 0x4bb   : > { %p1296_p0 = por %p1295_p13, %p1294_p12 }
 0x4bc   : > { %p1292_p11 = pneg %p1291_p10 }
 0x4be   : > { %p1297_p1 = pnand %p1296_p0, %p1292_p11 }
 0x4c0   : > { %1300 = shalt.err (!%p1297_p1)
}
 0x4c1   : > { %1178 = dma.vmem_to_hbm [thread:$0]  (%p1469_p3), %s939_s10, 16, %s1592_s23, %s916_s13  }
 0x4c2 PF: > { %p1184_p2 = scmp.ge.s32.totalorder %s1367_s12, 2  ;;  %s953_s14 = sand.u32 1, %s1339_s27  }
 0x4c3   : > { %s954_s29 = scalar_lea.sflag [#allocation3], %s953_s14 }
 0x4c4   : > { %p1181_p4 = pnand %p1184_p2, %p1478_p8 }
 0x4c6   : > { %p1182_p5 = pneg %p1181_p4 }
 0x4c8   : > { %1334 = dma.done.wait (%p1182_p5), %s954_s29, 16  }
 0x4c9   : > { %1336 = vsyncadd (%p1182_p5), %s954_s29, 4294967280  ;;  %s22_s12 = sadd.s32 1, %s1367_s12   ;;  %s1663_s11 = sld [smem:[#allocation5_spill]] }
 0x4ca   : > { %p19_p6 = scmp.ge.s32.totalorder %s22_s12, 6   ;;  %s1664_s29 = sld [smem:[#allocation11_spill]] }
 0x4cb   : > { %s1665_s30 = sld [smem:[#allocation6_spill]]  ;;  %s1669_s27 = smov %s1343_s28 }
 0x4cc   : > { %s1666_s9 = sld [smem:[#allocation7_spill]] }
 0x4cd   : > { %s1667_s10 = sld [smem:[#allocation8_spill]] }
 0x4ce   : > { %s1668_s18 = sld [smem:[#allocation9_spill]] }
 0x4cf   : > { %s1670_s28 = smov %s1663_s11 }
 0x4d0   :  { %21 = sbr.rel (!%p19_p6) target bundleno = 5 (0x5), region = 117 }
 0x4d4   : > { %s1671_s11 = smov %s1668_s18 }
 0x4d5   :  { %968 = vsyncpa [#allocation3], 1 }
 0x4d6   :  { %970 = vsyncpa [#allocation3 + $0x1], 1 }

</bundles_post_ra>
